<compile_context>
chip_gen: v6e
topology: v6e:2x2x1
jax: 0.10.0
libtpu: 0.0.40
codegen_flags: <defaults>
</compile_context>

<pallas_src>
import numpy as np
import jax
import jax.numpy as jnp
from jax import lax
from jax.experimental import pallas as pl
from jax.experimental.pallas import tpu as pltpu

SAMPLE_RATE = 16000
N_FFT = 400                       # torchaudio default
WIN_LENGTH = 160
HOP_LENGTH = 80                   # WIN_LENGTH == 2 * HOP_LENGTH is assumed below
N_MELS = 128
N_FREQS = N_FFT // 2 + 1          # 201 one-sided bins
PAD_F = 256                       # 201 padded to a lane-friendly 256
PAD_C = 128                       # each 80-sample chunk lane-padded to 128
PAD_K = 2 * PAD_C                 # contraction depth of the first matmul (two chunks)
LOG_EPS = 1e-14


def _hann_periodic(n):
    t = np.arange(n, dtype=np.float64)
    return 0.5 - 0.5 * np.cos(2.0 * np.pi * t / n)


def _windowed_dft_basis():
    """(PAD_K, 2*PAD_F) f32.

    Rows [0:80]   multiply the first  80-sample chunk of a frame,
    rows [128:208] multiply the second 80-sample chunk; all other rows are zero and line up
    with the zero lane padding of the chunks.  Columns [0:201] = hann*cos, [256:457] =
    -hann*sin, with the 160-sample periodic Hann window centered inside the 400-sample
    zero-padded STFT frame exactly like torch.stft (win_length < n_fft)."""
    hann = _hann_periodic(WIN_LENGTH)
    off = (N_FFT - WIN_LENGTH) // 2                        # 120
    f = np.arange(N_FREQS, dtype=np.float64)[None, :]
    w = np.zeros((PAD_K, 2 * PAD_F), dtype=np.float64)
    for half in range(2):
        t = np.arange(HOP_LENGTH, dtype=np.float64)[:, None] + off + half * HOP_LENGTH
        ang = 2.0 * np.pi * f * t / N_FFT
        hw = hann[half * HOP_LENGTH:(half + 1) * HOP_LENGTH, None]
        rows = slice(half * PAD_C, half * PAD_C + HOP_LENGTH)
        w[rows, :N_FREQS] = hw * np.cos(ang)
        w[rows, PAD_F:PAD_F + N_FREQS] = -hw * np.sin(ang)
    return w.astype(np.float32)


def _mel_filterbank_t():
    """(N_MELS, PAD_F) f32 HTK mel filterbank (norm=None), transposed; cols >= 201 are zero."""
    f_min, f_max = 0.0, float(SAMPLE_RATE // 2)
    all_freqs = np.linspace(0.0, SAMPLE_RATE / 2.0, N_FREQS)

    def hz2mel(f):
        return 2595.0 * np.log10(1.0 + f / 700.0)

    def mel2hz(m):
        return 700.0 * (10.0 ** (m / 2595.0) - 1.0)

    m_pts = np.linspace(hz2mel(f_min), hz2mel(f_max), N_MELS + 2)
    f_pts = mel2hz(m_pts)
    f_diff = f_pts[1:] - f_pts[:-1]                        # (n_mels + 1,)
    slopes = f_pts[None, :] - all_freqs[:, None]           # (n_freqs, n_mels + 2)
    down = -slopes[:, :-2] / f_diff[:-1]
    up = slopes[:, 2:] / f_diff[1:]
    fb = np.maximum(0.0, np.minimum(down, up))             # (n_freqs, n_mels)
    out = np.zeros((N_MELS, PAD_F), dtype=np.float64)
    out[:, :N_FREQS] = fb.T
    return out.astype(np.float32)


def _logmel_kernel(chunks_ref, halo_ref, dft_ref, melT_ref, out_ref):
    # chunks_ref: (tm, 128) f32  — chunk j of frame j for this tile (lanes 80.. are zero)
    # halo_ref  : (1, 128)  f32  — first chunk of the next tile (frame tm-1's second half)
    # dft_ref   : (256, 512) bf16 — windowed DFT basis [re | im]
    # melT_ref  : (128, 256) bf16 — mel filterbank, transposed
    # out_ref   : (128, tm) f32  — log-mel tile, already in (n_mels, time) layout
    a = chunks_ref[...]                                            # (tm, 128)
    b = jnp.concatenate([a[1:], halo_ref[...]], axis=0)            # (tm, 128) chunk j+1
    frames = jnp.concatenate([a, b], axis=1).astype(jnp.bfloat16)  # (tm, 256)

    spec = jnp.dot(frames, dft_ref[...],
                   preferred_element_type=jnp.float32)             # (tm, 512) = [re | im]
    re = spec[:, :PAD_F]
    im = spec[:, PAD_F:]
    power = (re * re + im * im).astype(jnp.bfloat16)               # (tm, 256), f32 math

    # melT (128, 256) @ power^T (256, tm) -> (128, tm): output born transposed (mels, time).
    mel = lax.dot_general(melT_ref[...], power, (((1,), (1,)), ((), ())),
                          preferred_element_type=jnp.float32)      # (128, tm)
    out_ref[...] = jnp.log(mel + LOG_EPS)


def _round_up(x, m):
    return (x + m - 1) // m * m


def _log_mel_impl(x, tile_m=1024):
    """x: (B, T) float32 -> (B, N_MELS, 1 + T // HOP_LENGTH) float32."""
    x = jnp.asarray(x, jnp.float32)
    B, T = x.shape
    n_frames = 1 + T // HOP_LENGTH
    pad = N_FFT // 2                                   # 200
    off = (N_FFT - WIN_LENGTH) // 2                    # 120

    # Frame-tile size: output lane dim -> multiple of 128; keep >= 2 frame tiles when
    # possible (v7x megacore + pipelining); cap at 4096 (v7x scoped-VMEM headroom).
    tm = int(min(tile_m, 4096))
    tm = min(tm, _round_up(max(n_frames // 2, 1), 128))
    tm = max(128, _round_up(tm, 128))
    n_frames_pad = _round_up(n_frames, tm)
    n_tiles = n_frames_pad // tm

    # center=True reflect padding (matches torch.stft).  Frame j covers
    # xp[:, j*80+120 : j*80+280] = [chunk_j | chunk_{j+1}] on the 80-sample chunk grid.
    xp = jnp.pad(x, ((0, 0), (pad, pad)), mode="reflect")
    slab = xp[:, off:off + (n_frames + 1) * HOP_LENGTH]
    chunks = slab.reshape(B, n_frames + 1, HOP_LENGTH)            # (B, n_frames+1, 80)
    # Zero-pad: frame axis -> n_frames_pad+1 rows, lane axis 80 -> 128 (the extra lanes hit
    # zero rows of the DFT basis).  This is the only HBM copy of the waveform the kernel reads.
    chunks = jnp.pad(chunks, ((0, 0),
                              (0, n_frames_pad + 1 - (n_frames + 1)),
                              (0, PAD_C - HOP_LENGTH)))
    main = chunks[:, :n_frames_pad]                               # (B, n_frames_pad, 128)
    halo = chunks[:, tm::tm][:, :, None, :]                       # (B, n_tiles, 1, 128)

    dft = jnp.asarray(_windowed_dft_basis(), jnp.bfloat16)        # (256, 512), resident
    mel_t = jnp.asarray(_mel_filterbank_t(), jnp.bfloat16)        # (128, 256), resident

    m_rows = B * n_frames_pad
    cost = pl.CostEstimate(
        flops=2 * m_rows * (PAD_K * 2 * PAD_F + PAD_F * N_MELS),
        transcendentals=m_rows * N_MELS,
        bytes_accessed=(main.size + halo.size) * 4 + (dft.size + mel_t.size) * 2
                       + m_rows * N_MELS * 4,
    )

    out = pl.pallas_call(
        _logmel_kernel,
        out_shape=jax.ShapeDtypeStruct((B, N_MELS, n_frames_pad), jnp.float32),
        grid=(B, n_tiles),
        in_specs=[
            pl.BlockSpec((None, tm, PAD_C), lambda b, i: (b, i, 0)),
            pl.BlockSpec((None, None, 1, PAD_C), lambda b, i: (b, i, 0, 0)),
            pl.BlockSpec((PAD_K, 2 * PAD_F), lambda b, i: (0, 0)),    # VMEM-resident constant
            pl.BlockSpec((N_MELS, PAD_F), lambda b, i: (0, 0)),       # VMEM-resident constant
        ],
        out_specs=pl.BlockSpec((None, N_MELS, tm), lambda b, i: (b, 0, i)),
        compiler_params=pltpu.CompilerParams(
            dimension_semantics=("parallel", "parallel")),
        cost_estimate=cost,
    )(main, halo, dft, mel_t)

    # Already (batch, n_mels, time); just drop padded frames.
    return out[:, :, :n_frames]


log_mel_spectrogram = jax.jit(_log_mel_impl, static_argnames=("tile_m",))


if __name__ == "__main__":
    key = jax.random.PRNGKey(0)
    # B=2, one second of 16 kHz audio.
    x = jax.random.normal(key, (2, 16000), dtype=jnp.float32)
    y = log_mel_spectrogram(x)
    jax.block_until_ready(y)
    assert y.shape == (2, N_MELS, 1 + 16000 // HOP_LENGTH)
    assert bool(jnp.all(jnp.isfinite(y)))
    print("KERNEL_OK")
</pallas_src>

<mosaic_0001>
module attributes {stable_mosaic.version = 11 : i64} {
  func.func @_logmel_kernel(%arg0: i32, %arg1: i32, %arg2: memref<1x128x128xf32, #tpu.memory_space<vmem>>, %arg3: memref<1x1x1x128xf32, #tpu.memory_space<vmem>>, %arg4: memref<256x512xbf16, #tpu.memory_space<vmem>>, %arg5: memref<128x256xbf16, #tpu.memory_space<vmem>>, %arg6: memref<1x128x128xf32, #tpu.memory_space<vmem>>) attributes {dimension_semantics = [#tpu.dimension_semantics<parallel>, #tpu.dimension_semantics<parallel>], iteration_bounds = array<i64: 2, 2>, scalar_prefetch = 0 : i64, scratch_operands = 0 : i64, tpu.core_type = #tpu.core_type<tc>, window_params = [{transform_indices = @transform_0, window_bounds = array<i64: 1, 128, 128>}, {transform_indices = @transform_1, window_bounds = array<i64: 1, 1, 1, 128>}, {pipeline_mode = #tpu.pipeline_mode<synchronous>, transform_indices = @transform_2, window_bounds = array<i64: 256, 512>}, {pipeline_mode = #tpu.pipeline_mode<synchronous>, transform_indices = @transform_3, window_bounds = array<i64: 128, 256>}, {transform_indices = @transform_4, window_bounds = array<i64: 1, 128, 128>}]} {
    %c0 = arith.constant 0 : index
    %c0_0 = arith.constant 0 : index
    %c0_1 = arith.constant 0 : index
    %0 = vector.load %arg2[%c0, %c0_0, %c0_1] : memref<1x128x128xf32, #tpu.memory_space<vmem>>, vector<1x128x128xf32>
    %1 = vector.shape_cast %0 : vector<1x128x128xf32> to vector<128x128xf32>
    %2 = vector.extract_strided_slice %1 {offsets = [1, 0], sizes = [127, 128], strides = [1, 1]} : vector<128x128xf32> to vector<127x128xf32>
    %c0_2 = arith.constant 0 : index
    %c0_3 = arith.constant 0 : index
    %c0_4 = arith.constant 0 : index
    %c0_5 = arith.constant 0 : index
    %3 = vector.load %arg3[%c0_2, %c0_3, %c0_4, %c0_5] : memref<1x1x1x128xf32, #tpu.memory_space<vmem>>, vector<1x1x1x128xf32>
    %4 = vector.shape_cast %3 : vector<1x1x1x128xf32> to vector<1x128xf32>
    %5 = tpu.concatenate %2, %4 in 0 : vector<127x128xf32>, vector<1x128xf32> -> vector<128x128xf32>
    %6 = tpu.concatenate %1, %5 in 1 : vector<128x128xf32>, vector<128x128xf32> -> vector<128x256xf32>
    %7 = arith.truncf %6 : vector<128x256xf32> to vector<128x256xbf16>
    %c0_6 = arith.constant 0 : index
    %c0_7 = arith.constant 0 : index
    %8 = vector.load %arg4[%c0_6, %c0_7] : memref<256x512xbf16, #tpu.memory_space<vmem>>, vector<256x512xbf16>
    %cst = arith.constant dense<0.000000e+00> : vector<128x512xf32>
    %9 = tpu.matmul %7, %8, %cst {dimension_numbers = #tpu.dot_dimension_numbers<[1], [0], [0], [1], [0, 0, 1, 1], [], []>} : vector<128x256xbf16>, vector<256x512xbf16>, vector<128x512xf32> -> vector<128x512xf32>
    %10 = vector.extract_strided_slice %9 {offsets = [0, 0], sizes = [128, 256], strides = [1, 1]} : vector<128x512xf32> to vector<128x256xf32>
    %11 = vector.extract_strided_slice %9 {offsets = [0, 256], sizes = [128, 256], strides = [1, 1]} : vector<128x512xf32> to vector<128x256xf32>
    %12 = arith.mulf %10, %10 : vector<128x256xf32>
    %13 = arith.mulf %11, %11 : vector<128x256xf32>
    %14 = arith.addf %12, %13 : vector<128x256xf32>
    %15 = arith.truncf %14 : vector<128x256xf32> to vector<128x256xbf16>
    %c0_8 = arith.constant 0 : index
    %c0_9 = arith.constant 0 : index
    %16 = vector.load %arg5[%c0_8, %c0_9] : memref<128x256xbf16, #tpu.memory_space<vmem>>, vector<128x256xbf16>
    %cst_10 = arith.constant dense<0.000000e+00> : vector<128x128xf32>
    %17 = tpu.matmul %16, %15, %cst_10 {dimension_numbers = #tpu.dot_dimension_numbers<[1], [1], [0], [0], [0, 0, 1, 0], [], []>} : vector<128x256xbf16>, vector<128x256xbf16>, vector<128x128xf32> -> vector<128x128xf32>
    %cst_11 = arith.constant 9.99999982E-15 : f32
    %18 = vector.broadcast %cst_11 : f32 to vector<128x128xf32>
    %19 = arith.addf %17, %18 : vector<128x128xf32>
    %20 = math.log %19 : vector<128x128xf32>
    %c0_12 = arith.constant 0 : index
    %c0_13 = arith.constant 0 : index
    %c0_14 = arith.constant 0 : index
    %21 = vector.load %arg6[%c0_12, %c0_13, %c0_14] : memref<1x128x128xf32, #tpu.memory_space<vmem>>, vector<1x128x128xf32>
    %22 = vector.shape_cast %21 : vector<1x128x128xf32> to vector<128x128xf32>
    %23 = vector.shape_cast %20 : vector<128x128xf32> to vector<1x128x128xf32>
    tpu.vector_store %arg6[%c0_12, %c0_13, %c0_14], %23 {strides = array<i32>} : memref<1x128x128xf32, #tpu.memory_space<vmem>>, vector<1x128x128xf32>,
    return
  }
  func.func @transform_0(%arg0: i32, %arg1: i32) -> (i32, i32, i32) {
    %c0_i32 = arith.constant 0 : i32
    %c0_i32_0 = arith.constant 0 : i32
    return %arg0, %arg1, %c0_i32 : i32, i32, i32
  }
  func.func @transform_1(%arg0: i32, %arg1: i32) -> (i32, i32, i32, i32) {
    %c0_i32 = arith.constant 0 : i32
    %c0_i32_0 = arith.constant 0 : i32
    %c0_i32_1 = arith.constant 0 : i32
    return %arg0, %arg1, %c0_i32, %c0_i32_0 : i32, i32, i32, i32
  }
  func.func @transform_2(%arg0: i32, %arg1: i32) -> (i32, i32) {
    %c0_i32 = arith.constant 0 : i32
    %c0_i32_0 = arith.constant 0 : i32
    %c0_i32_1 = arith.constant 0 : i32
    return %c0_i32, %c0_i32_0 : i32, i32
  }
  func.func @transform_3(%arg0: i32, %arg1: i32) -> (i32, i32) {
    %c0_i32 = arith.constant 0 : i32
    %c0_i32_0 = arith.constant 0 : i32
    %c0_i32_1 = arith.constant 0 : i32
    return %c0_i32, %c0_i32_0 : i32, i32
  }
  func.func @transform_4(%arg0: i32, %arg1: i32) -> (i32, i32, i32) {
    %c0_i32 = arith.constant 0 : i32
    %c0_i32_0 = arith.constant 0 : i32
    return %arg0, %c0_i32, %arg1 : i32, i32, i32
  }
}

</mosaic_0001>

<bundles_post_ra>
// kernel: reverse.1
= control target key start
LH: loop header
LB: loop body
LE: loop exit
PB: predicated region body
PF: predicated region fallthrough
CT: control target
= control target key end

     0   :  { %v2_v0 = vlaneseq  ;;  %s318_s0 = inlined_call_operand.vmem [shape: f32[2,256], index: 0, kind: input, shape index: {}]   ;;  %s319_s1 = inlined_call_operand.vmem [shape: f32[2,256], index: 1, kind: output, shape index: {}]  }
   0x2   :  { %v3_v1 = vsub.s32 127, %v2_v0 }
   0x4   :  { %4 = vset.pattern.permute.xlu0 %v3_v1 }
   0x5   :  { %s278_s6 = smov 0   ;;  %s280_s7 = smov 0  }
   0x6   :  { %s282_s8 = smov 0  }
   0x7 LB: > { %s208_s9 = sadd.s32 4294967295, %s266_s8   ;;  %s19_s10 = sadd.s32 1, %s262_s7  ;;  %s266_s8 = sphi %s282_s8, %s10_s8   ;;  %s262_s7 = sphi %s280_s7, %s321_s7   ;;  %s258_s6 = sphi %s278_s6, %s320_s6  }
   0x8   : > { %p20_p0 = scmp.ge.s32.totalorder %s19_s10, 2  ;;  %p210_p1 = scmp.ge.s32.totalorder %s266_s8, 2 }
   0x9   : > { %s38_s11 = sand.u32 (!%p210_p1), 1, %s266_s8   ;;  %s41_s12 = ssub.s32 (!%p210_p1), 1, %s262_s7 }
   0xa   : > { %s323_s10 = smov (%p20_p0, %s19_s10), 0  ;;  %36 = sbr.rel (%p210_p1) target bundleno = 17 (0x11), region = 16 }
   0xb   : > { %s211_s13 = sshll.u32 (!%p210_p1), %s38_s11, 1  ;;  %s212_s14 = sshll.u32 (!%p210_p1), %s41_s12, 1 }
   0xc   : > { %s45_s17 = scalar_lea.vmem (!%p210_p1), %s318_s0, %s212_s14  ;;  %s40_s18 = scalar_lea.vmem (!%p210_p1), [#allocation1], %s211_s13 }
   0xf   : > { %v62_v2 = vld [vmem:[%s45_s17] sm:$0x3] }
  0x10   : > { %63 = vst [vmem:[%s40_s18] sm:$0x3] %v62_v2 }
  0x11 PF: > { %p213_p2 = scmp.ge.s32.totalorder %s266_s8, 1  ;;  %p80_p3 = scmp.lt.s32.totalorder %s266_s8, 3 }
  0x13   : > { %p81_p4 = pnand %p213_p2, %p80_p3 }
  0x14   : > { %s91_s19 = sand.u32 (!%p81_p4), 1, %s208_s9   ;;  %s217_s23 = sshll.u32 (!%p81_p4), %s258_s6, 1 }
  0x15   : > { %84 = sbr.rel (%p81_p4) target bundleno = 176 (0xb0), region = 50  ;;  %s214_s20 = sshll.u32 (!%p81_p4), %s91_s19, 1 }
  0x16   : > { %s93_s21 = scalar_lea.vmem (!%p81_p4), [#allocation1], %s214_s20  ;;  %s97_s22 = scalar_lea.vmem (!%p81_p4), [#allocation3], %s214_s20 }
  0x17   : > { %s123_s26 = scalar_lea.vmem (!%p81_p4), %s319_s1, %s217_s23 }
  0x1a   : > { %v101_v3 = vld [vmem:[%s93_s21] sm:$0x3] }
  0x1b   : > { %102 = vst [vmem:[#allocation0] sm:$0x3] %v101_v3 }
  0x22   : > { %v104_v4 = vld [vmem:[#allocation0] sm:$0xff] }
  0x23   : > { %105 = vperm.xlu0 %4, %v104_v4  }
  0x9e   : > { %v106_v5 = vpop.permute.xlu0 %105 }
  0x9f   : > { %107 = vst [vmem:[#allocation2] sm:$0xff] %v106_v5 }
  0xa6   : > { %v112_v6 = vld [vmem:[#allocation2] sm:$0x3] }
  0xa7   : > { %115 = vst [vmem:[%s97_s22] sm:$0x3] %v112_v6 }
  0xae   : > { %v140_v7 = vld [vmem:[%s97_s22] sm:$0x3] }
  0xaf   : > { %141 = vst [vmem:[%s123_s26] sm:$0x3] %v140_v7 }
  0xb0 PF: > { %s10_s8 = sadd.s32 1, %s266_s8   ;;  %s320_s6 = smov %s262_s7 }
  0xb1   : > { %p7_p5 = scmp.ge.s32.totalorder %s10_s8, 4   ;;  %s321_s7 = smov %s323_s10 }
  0xb3   :  { %9 = sbr.rel (!%p7_p5) target bundleno = 7 (0x7), region = 110 }

// kernel: _log_mel_impl.1
= control target key start
LH: loop header
LB: loop body
LE: loop exit
PB: predicated region body
PF: predicated region fallthrough
CT: control target
= control target key end

     0   :  { %s1908_s15 = smov 0   ;;  %s1910_s16 = smov 0   ;;  %s2433_s0 = inlined_call_operand.vmem [shape: f32[2,256,128], index: 0, kind: input, shape index: {}]   ;;  %s2434_s1 = inlined_call_operand.vmem [shape: f32[2,2,1,128], index: 1, kind: input, shape index: {}]   ;;  %s2435_s2 = inlined_call_operand.vmem [shape: bf16[256,512], index: 2, kind: input, shape index: {}]   ;;  %s2436_s3 = inlined_call_operand.vmem [shape: bf16[128,256], index: 3, kind: input, shape index: {}]   ;;  %s2437_s4 = inlined_call_operand.vmem [shape: f32[2,128,256], index: 4, kind: output, shape index: {}]  }
   0x1   :  { %s1912_s17 = smov 0   ;;  %s1914_s18 = smov 0  }
   0x2   :  { %s1916_s19 = smov 0   ;;  %s1918_s20 = smov 0  }
   0x3   :  { %s1920_s21 = smov 0  }
   0x4 LB: > { %s23_s22 = sadd.s32 1, %s1873_s19  ;;  %s26_s23 = sadd.s32 1, %s1877_s20  ;;  %s1881_s21 = sphi %s1920_s21, %s14_s21   ;;  %s1877_s20 = sphi %s1918_s20, %s2444_s20   ;;  %s1873_s19 = sphi %s1916_s19, %s2443_s19   ;;  %s1869_s18 = sphi %s1914_s18, %s2442_s18   ;;  %s1865_s17 = sphi %s1912_s17, %s2441_s17   ;;  %s1861_s16 = sphi %s1910_s16, %s2440_s16   ;;  %s1857_s15 = sphi %s1908_s15, %s2439_s15  }
   0x5   : > { %p24_p0 = scmp.ge.s32.totalorder %s23_s22, 2  ;;  %s1507_s24 = sadd.s32 4294967295, %s1881_s21  }
   0x6   : > { %p143_p1 = scmp.ne.s32.totalorder %s1861_s16, %s1857_s15  ;;  %p144_p2 = scmp.eq.s32.totalorder %s1507_s24, 3 }
   0x7   : > { %s2446_s22 = smov (%p24_p0, %s23_s22), 0  ;;  %s2448_s23 = smov (!%p24_p0, %s26_s23), %s1877_s20 }
   0x8   : > { %s129_s25 = ssub.s32 %s1873_s19, %s2446_s22  ;;  %p28_p3 = scmp.ge.s32.totalorder %s2448_s23, 2 }
   0x9   : > { %p1511_p4 = scmp.ge.s32.totalorder %s1881_s21, 1  ;;  %p1954_p5 = por %p144_p2, %p143_p1 }
   0xa   : > { %p197_p6 = scmp.lt.s32.totalorder %s1881_s21, 5  ;;  %s2450_s23 = smov (%p28_p3, %s2448_s23), 0 }
   0xb   : > { %s128_s27 = ssub.s32 %s1877_s20, %s2450_s23  ;;  %s133_s29 = sadd.s32 1, %s1861_s16 }
   0xc   : > { %p198_p7 = pnand %p1511_p4, %p197_p6  ;;  %s130_s28 = sor.u32 %s129_s25, %s128_s27 }
   0xd   : > { %p131_p8 = scmp.eq.s32.totalorder %s130_s28, 0  ;;  %s1513_s12 = sshll.u32 (!%p198_p7), %s1865_s17, 4 }
   0xe   : > { %201 = sbr.rel (%p198_p7) target bundleno = 658 (0x292), region = 36  ;;  %p234_p9 = scmp.lt.s32.totalorder (!%p198_p7), %s1869_s18, 1 }
   0xf   : > { %s1965_s30 = scalar_select %p131_p8, %s1861_s16, %s133_s29  }
  0x10   : > { %p236_p10 = scmp.lt.s32.totalorder (!%p198_p7), %s1513_s12, 31  ;;  %p245_p11 = scmp.lt.s32.totalorder (!%p198_p7), %s1865_s17, 1 }
  0x13   : > { %v1675_v0 = vld [vmem:[%s2435_s2 + $0xe4] ss:$16 sps:$4 sm:$0xff]   ;;  %v1677_v1 = vld [vmem:[%s2435_s2 + $0xec] ss:$16 sps:$4 sm:$0xff]   ;;  %v1679_v2 = vld [vmem:[%s2435_s2 + $0xe0] ss:$16 sps:$4 sm:$0xff]  }
  0x14   : > { %739 = vmatprep.subr.bf16.mxu0 %v1675_v0  ;;  %v1680_v3 = vld [vmem:[%s2435_s2 + $0xe8] ss:$16 sps:$4 sm:$0xff]   ;;  %852 = vmatprep.subr.bf16.mxu1 %v1677_v1  ;;  %v1681_v4 = vld [vmem:[%s2435_s2 + $0xc4] ss:$16 sps:$4 sm:$0xff]   ;;  %v1683_v5 = vld [vmem:[%s2435_s2 + $0xcc] ss:$16 sps:$4 sm:$0xff]  }
  0x15   : > { %740 = vmatpush1.bf16.msra.mxu0 %v1679_v2  ;;  %853 = vmatpush1.bf16.msra.mxu1 %v1680_v3  ;;  %v1685_v6 = vld [vmem:[%s2435_s2 + $0xc0] ss:$16 sps:$4 sm:$0xff]   ;;  %v1686_v7 = vld [vmem:[%s2435_s2 + $0xc8] ss:$16 sps:$4 sm:$0xff]   ;;  %v1687_v8 = vld [vmem:[%s2435_s2 + $0xa4] ss:$16 sps:$4 sm:$0xff]  }
  0x16   : > { %741 = vmatprep.subr.bf16.mxu0 %v1681_v4  ;;  %854 = vmatprep.subr.bf16.mxu1 %v1683_v5  ;;  %v1689_v9 = vld [vmem:[%s2435_s2 + $0xac] ss:$16 sps:$4 sm:$0xff]   ;;  %v1691_v10 = vld [vmem:[%s2435_s2 + $0xa0] ss:$16 sps:$4 sm:$0xff]   ;;  %v1692_v11 = vld [vmem:[%s2435_s2 + $0xa8] ss:$16 sps:$4 sm:$0xff]  }
  0x17   : > { %v1693_v12 = vld [vmem:[%s2435_s2 + $0x84] ss:$16 sps:$4 sm:$0xff]   ;;  %v1695_v13 = vld [vmem:[%s2435_s2 + $0x8c] ss:$16 sps:$4 sm:$0xff]   ;;  %v1697_v14 = vld [vmem:[%s2435_s2 + $0x80] ss:$16 sps:$4 sm:$0xff]  }
  0x18   : > { %v1698_v15 = vld [vmem:[%s2435_s2 + $0x88] ss:$16 sps:$4 sm:$0xff]   ;;  %v1699_v16 = vld [vmem:[%s2435_s2 + $0x64] ss:$16 sps:$4 sm:$0xff]   ;;  %v1701_v17 = vld [vmem:[%s2435_s2 + $0x6c] ss:$16 sps:$4 sm:$0xff]  }
  0x19   : > { %742 = vmatpush1.bf16.msra.mxu0 %v1685_v6  ;;  %855 = vmatpush1.bf16.msra.mxu1 %v1686_v7  ;;  %v1703_v18 = vld [vmem:[%s2435_s2 + $0x60] ss:$16 sps:$4 sm:$0xff]   ;;  %v1704_v19 = vld [vmem:[%s2435_s2 + $0x68] ss:$16 sps:$4 sm:$0xff]   ;;  %v1705_v20 = vld [vmem:[%s2435_s2 + $0x44] ss:$16 sps:$4 sm:$0xff]  }
  0x1a   : > { %743 = vmatprep.subr.bf16.mxu0 %v1687_v8  ;;  %856 = vmatprep.subr.bf16.mxu1 %v1689_v9  ;;  %v1707_v21 = vld [vmem:[%s2435_s2 + $0x4c] ss:$16 sps:$4 sm:$0xff]   ;;  %v1709_v22 = vld [vmem:[%s2435_s2 + $0x40] ss:$16 sps:$4 sm:$0xff]   ;;  %v1710_v23 = vld [vmem:[%s2435_s2 + $0x48] ss:$16 sps:$4 sm:$0xff]  }
  0x1b   : > { %v1711_v24 = vld [vmem:[%s2435_s2 + $0x24] ss:$16 sps:$4 sm:$0xff]   ;;  %v1713_v25 = vld [vmem:[%s2435_s2 + $0x2c] ss:$16 sps:$4 sm:$0xff]   ;;  %v1715_v26 = vld [vmem:[%s2435_s2 + $0x20] ss:$16 sps:$4 sm:$0xff]  }
  0x1c   : > { %v1716_v27 = vld [vmem:[%s2435_s2 + $0x28] ss:$16 sps:$4 sm:$0xff]   ;;  %v1717_v28 = vld [vmem:[%s2435_s2 + $0x4] ss:$16 sps:$4 sm:$0xff]   ;;  %v1719_v29 = vld [vmem:[%s2435_s2 + $0xc] ss:$16 sps:$4 sm:$0xff]  }
  0x1d   : > { %744 = vmatpush1.bf16.msra.mxu0 %v1691_v10  ;;  %857 = vmatpush1.bf16.msra.mxu1 %v1692_v11  ;;  %s2060_s6 = scalar_select %p234_p9, %s1869_s18, 1  ;;  %v1721_v30 = vld [vmem:[%s2435_s2] ss:$16 sps:$4 sm:$0xff]   ;;  %v1722_v31 = vld [vmem:[%s2435_s2 + $0x8] ss:$16 sps:$4 sm:$0xff]   ;;  %vm284_vm0 = vcmask 1046528  }
  0x1e   : > { %745 = vmatprep.subr.bf16.mxu0 %v1693_v12  ;;  %858 = vmatprep.subr.bf16.mxu1 %v1695_v13  ;;  %v1723_v32 = vld [vmem:[%s2435_s2 + $0x1e4] ss:$16 sps:$4 sm:$0xff]   ;;  %v1725_v33 = vld [vmem:[%s2435_s2 + $0x1ec] ss:$16 sps:$4 sm:$0xff]   ;;  %s2452_s12 = smov (!%p236_p10, %s1513_s12), 31  ;;  %s1599_s7 = sshll.u32 (%p1954_p5), %s1869_s18, 5 }
  0x1f   : > { %s1514_s25 = sshll.u32 %s2060_s6, 5  ;;  %v1727_v34 = vld [vmem:[%s2435_s2 + $0x1e0] ss:$16 sps:$4 sm:$0xff]   ;;  %v1728_v35 = vld [vmem:[%s2435_s2 + $0x1e8] ss:$16 sps:$4 sm:$0xff]   ;;  %s1326_s26 = sadd.s32 (%p1954_p5), %s1865_s17, %s1599_s7 }
  0x20   : > { %v1729_v36 = vld [vmem:[%s2435_s2 + $0x1c4] ss:$16 sps:$4 sm:$0xff]   ;;  %v1731_v37 = vld [vmem:[%s2435_s2 + $0x1cc] ss:$16 sps:$4 sm:$0xff]   ;;  %s239_s11 = sadd.s32 %s1514_s25, %s2452_s12  ;;  %v1733_v38 = vld [vmem:[%s2435_s2 + $0x1c0] ss:$16 sps:$4 sm:$0xff]  }
  0x21   : > { %746 = vmatpush1.bf16.msra.mxu0 %v1697_v14  ;;  %859 = vmatpush1.bf16.msra.mxu1 %v1698_v15  ;;  %v1734_v39 = vld [vmem:[%s2435_s2 + $0x1c8] ss:$16 sps:$4 sm:$0xff]   ;;  %v1735_v40 = vld [vmem:[%s2435_s2 + $0x1a4] ss:$16 sps:$4 sm:$0xff]   ;;  %s1515_s5 = sshll.u32 %s239_s11, 3  ;;  %s1516_s25 = sshll.u32 %s2060_s6, 1 }
  0x22   : > { %747 = vmatprep.subr.bf16.mxu0 %v1699_v16  ;;  %860 = vmatprep.subr.bf16.mxu1 %v1701_v17  ;;  %v1737_v41 = vld [vmem:[%s2435_s2 + $0x1ac] ss:$16 sps:$4 sm:$0xff]   ;;  %v1739_v42 = vld [vmem:[%s2435_s2 + $0x1a0] ss:$16 sps:$4 sm:$0xff]   ;;  %v1740_v43 = vld [vmem:[%s2435_s2 + $0x1a8] ss:$16 sps:$4 sm:$0xff]   ;;  %s2109_s24 = scalar_lea.vmem %s2433_s0, %s1515_s5 }
  0x23   : > { %v1741_v44 = vld [vmem:[%s2435_s2 + $0x184] ss:$16 sps:$4 sm:$0xff]   ;;  %s246_s28 = scalar_select %p245_p11, %s1865_s17, 1  ;;  %v1743_v45 = vld [vmem:[%s2435_s2 + $0x18c] ss:$16 sps:$4 sm:$0xff]  }
  0x24   : > { %v2122_v46 = vld [vmem:[%s2109_s24] sm:$0xff]  ;;  %v2125_v47 = vld [vmem:[%s2109_s24 + $0x8] sm:$0xff]  ;;  %v2128_v48 = vld [vmem:[%s2109_s24 + $0x10] sm:$0xff]  ;;  %s1600_s8 = sshll.u32 (%p1954_p5), %s1326_s26, 3 }
  0x25   : > { %748 = vmatpush1.bf16.msra.mxu0 %v1703_v18  ;;  %861 = vmatpush1.bf16.msra.mxu1 %v1704_v19  ;;  %v285_v49 = vrot.slane %v2122_v46, 1  ;;  %v1745_v50 = vld [vmem:[%s2435_s2 + $0x180] ss:$16 sps:$4 sm:$0xff]   ;;  %v1746_v51 = vld [vmem:[%s2435_s2 + $0x188] ss:$16 sps:$4 sm:$0xff]   ;;  %v286_v52 = vrot.slane %v2125_v47, 1  ;;  %s248_s6 = sadd.s32 %s1516_s25, %s246_s28 }
  0x26   : > { %749 = vmatprep.subr.bf16.mxu0 %v1705_v20  ;;  %862 = vmatprep.subr.bf16.mxu1 %v1707_v21  ;;  %v288_v53 = vrot.slane %v2128_v48, 1  ;;  %v1747_v54 = vld [vmem:[%s2435_s2 + $0x164] ss:$16 sps:$4 sm:$0xff]   ;;  %v1749_v55 = vld [vmem:[%s2435_s2 + $0x16c] ss:$16 sps:$4 sm:$0xff]   ;;  %s249_s13 = scalar_lea.vmem %s2434_s1, %s248_s6  ;;  %s230_s25 = sand.u32 1, %s1857_s15  }
  0x27   : > { %v1751_v56 = vld [vmem:[%s2435_s2 + $0x160] ss:$16 sps:$4 sm:$0xff]   ;;  %v287_v57 = vsel %vm284_vm0, %v285_v49, %v286_v52  ;;  %v1752_v59 = vld [vmem:[%s2435_s2 + $0x168] ss:$16 sps:$4 sm:$0xff]   ;;  %v1753_v60 = vld [vmem:[%s2435_s2 + $0x144] ss:$16 sps:$4 sm:$0xff]  }
  0x28   : > { %v289_v58 = vsel %vm284_vm0, %v286_v52, %v288_v53  ;;  %v1755_v61 = vld [vmem:[%s2435_s2 + $0x14c] ss:$16 sps:$4 sm:$0xff]   ;;  %v2163_v63 = vld [vmem:[%s2109_s24 + $0x70] sm:$0xff]  ;;  %v1758_v2 = vld [vmem:[%s2435_s2 + $0x148] ss:$16 sps:$4 sm:$0xff]   ;;  %s1512_s5 = sshll.u32 %s230_s25, 7 }
  0x29   : > { %750 = vmatpush1.bf16.msra.mxu0 %v1709_v22  ;;  %863 = vmatpush1.bf16.msra.mxu1 %v1710_v23  ;;  %v340_v62 = vpack.c.bf16 %v289_v58, %v287_v57  ;;  %v2166_v0 = vld [vmem:[%s2109_s24 + $0x78] sm:$0xff]  ;;  %v1757_v1 = vld [vmem:[%s2435_s2 + $0x140] ss:$16 sps:$4 sm:$0xff]   ;;  %v1759_v4 = vld [vmem:[%s2435_s2 + $0x124] ss:$16 sps:$4 sm:$0xff]   ;;  %v312_v6 = vrot.slane %v2163_v63, 1 }
  0x2a   : > { %751 = vmatprep.subr.bf16.mxu0 %v1711_v24  ;;  %864 = vmatprep.subr.bf16.mxu1 %v1713_v25  ;;  %v1517_v3 = vld [vmem:[%s249_s13] ss:$0 sm:$0xff]  ;;  %v1761_v5 = vld [vmem:[%s2435_s2 + $0x12c] ss:$16 sps:$4 sm:$0xff]   ;;  %v314_v7 = vrot.slane %v2166_v0, 1  ;;  %v257_v24 = vld [vmem:[%s2109_s24 + $0x30] sm:$0xff]  ;;  %v339_v25 = vpack.c.bf16 %v2125_v47, %v2122_v46  ;;  %s1328_s13 = scalar_lea.vmem (%p1954_p5), %s2437_s4, %s1600_s8 }
  0x2b   : > { %771 = vmatprep.mubr.bf16.mxu0 %v340_v62  ;;  %884 = vmatprep.mubr.bf16.mxu1 %v340_v62  ;;  %v254_v8 = vld [vmem:[%s2109_s24 + $0x18] sm:$0xff]  ;;  %v255_v9 = vld [vmem:[%s2109_s24 + $0x20] sm:$0xff]  ;;  %v256_v23 = vld [vmem:[%s2109_s24 + $0x28] sm:$0xff]  ;;  %s2371_s15 = scalar_lea.vmem [#allocation2], %s1512_s5 }
  0x2c   : > { %v315_v10 = vsel %vm284_vm0, %v312_v6, %v314_v7  ;;  %v338_v11 = vsel %vm284_vm0, %v314_v7, %v1517_v3  ;;  %v1763_v12 = vld [vmem:[%s2435_s2 + $0x120] ss:$16 sps:$4 sm:$0xff]   ;;  %v1764_v13 = vld [vmem:[%s2435_s2 + $0x128] ss:$16 sps:$4 sm:$0xff]   ;;  %v1765_v15 = vld [vmem:[%s2435_s2 + $0x104] ss:$16 sps:$4 sm:$0xff]  }
  0x2d   : > { %752 = vmatpush1.bf16.msra.mxu0 %v1715_v26  ;;  %865 = vmatpush1.bf16.msra.mxu1 %v1716_v27  ;;  %v2194_v14 = vpack.c.bf16 %v338_v11, %v315_v10  ;;  %v1767_v16 = vld [vmem:[%s2435_s2 + $0x10c] ss:$16 sps:$4 sm:$0xff]   ;;  %v290_v17 = vrot.slane %v254_v8, 1  ;;  %v292_v18 = vrot.slane %v255_v9, 1  ;;  %v1769_v19 = vld [vmem:[%s2435_s2 + $0x100] ss:$16 sps:$4 sm:$0xff]  }
  0x2e   : > { %753 = vmatprep.subr.bf16.mxu0 %v1717_v28  ;;  %866 = vmatprep.subr.bf16.mxu1 %v1719_v29  ;;  %v1770_v20 = vld [vmem:[%s2435_s2 + $0x108] ss:$16 sps:$4 sm:$0xff]   ;;  %v294_v27 = vrot.slane %v256_v23, 1  ;;  %v296_v28 = vrot.slane %v257_v24, 1  ;;  %v1773_v3 = vld [vmem:[%s2436_s3 + $0x4] ss:$8 sps:$4 sm:$0xff]  }
  0x2f   : > { %v291_v21 = vsel %vm284_vm0, %v288_v53, %v290_v17  ;;  %v293_v22 = vsel %vm284_vm0, %v290_v17, %v292_v18  ;;  %v262_v47 = vld [vmem:[%s2109_s24 + $0x58] sm:$0xff] }
  0x30   : > { %v342_v26 = vpack.c.bf16 %v293_v22, %v291_v21  ;;  %v295_v29 = vsel %vm284_vm0, %v292_v18, %v294_v27 }
  0x31   : > { %754 = vmatpush1.bf16.msra.mxu0 %v1721_v30  ;;  %867 = vmatpush1.bf16.msra.mxu1 %v1722_v31  ;;  %v297_v30 = vsel %vm284_vm0, %v294_v27, %v296_v28  ;;  %v258_v31 = vld [vmem:[%s2109_s24 + $0x38] sm:$0xff] }
  0x32   : > { %755 = vmatprep.subr.bf16.mxu0 %v1723_v32  ;;  %868 = vmatprep.subr.bf16.mxu1 %v1725_v33  ;;  %v259_v32 = vld [vmem:[%s2109_s24 + $0x40] sm:$0xff]  ;;  %v341_v33 = vpack.c.bf16 %v254_v8, %v2128_v48  ;;  %v345_v49 = vpack.c.bf16 %v258_v31, %v257_v24 }
  0x33   : > { %v263_v48 = vld [vmem:[%s2109_s24 + $0x60] sm:$0xff] }
  0x34   : > { %v308_v52 = vrot.slane %v263_v48, 1 }
  0x35   : > { %756 = vmatpush2.bf16.msra.mxu0 %v1727_v34  ;;  %869 = vmatpush2.bf16.msra.mxu1 %v1728_v35  ;;  %v344_v34 = vpack.c.bf16 %v297_v30, %v295_v29  ;;  %v298_v35 = vrot.slane %v258_v31, 1 }
  0x36   : > { %757 = vmatprep.subr.bf16.mxu0 %v1729_v36  ;;  %870 = vmatprep.subr.bf16.mxu1 %v1731_v37  ;;  %v300_v36 = vrot.slane %v259_v32, 1 }
  0x37   : > { %v299_v37 = vsel %vm284_vm0, %v296_v28, %v298_v35 }
  0x39   : > { %758 = vmatpush2.bf16.msra.mxu0 %v1733_v38  ;;  %871 = vmatpush2.bf16.msra.mxu1 %v1734_v39  ;;  %v301_v38 = vsel %vm284_vm0, %v298_v35, %v300_v36  ;;  %v260_v39 = vld [vmem:[%s2109_s24 + $0x48] sm:$0xff] }
  0x3a   : > { %759 = vmatprep.subr.bf16.mxu0 %v1735_v40  ;;  %872 = vmatprep.subr.bf16.mxu1 %v1737_v41  ;;  %v261_v40 = vld [vmem:[%s2109_s24 + $0x50] sm:$0xff]  ;;  %v343_v41 = vpack.c.bf16 %v256_v23, %v255_v9 }
  0x3d   : > { %760 = vmatpush2.bf16.msra.mxu0 %v1739_v42  ;;  %873 = vmatpush2.bf16.msra.mxu1 %v1740_v43  ;;  %v346_v42 = vpack.c.bf16 %v301_v38, %v299_v37  ;;  %v302_v43 = vrot.slane %v260_v39, 1 }
  0x3e   : > { %761 = vmatprep.subr.bf16.mxu0 %v1741_v44  ;;  %874 = vmatprep.subr.bf16.mxu1 %v1743_v45  ;;  %v304_v44 = vrot.slane %v261_v40, 1 }
  0x3f   : > { %v303_v45 = vsel %vm284_vm0, %v300_v36, %v302_v43 }
  0x40   : > { %v305_v46 = vsel %vm284_vm0, %v302_v43, %v304_v44 }
  0x41   : > { %762 = vmatpush2.bf16.msra.mxu0 %v1745_v50  ;;  %875 = vmatpush2.bf16.msra.mxu1 %v1746_v51  ;;  %v348_v50 = vpack.c.bf16 %v305_v46, %v303_v45  ;;  %v306_v51 = vrot.slane %v262_v47, 1 }
  0x42   : > { %763 = vmatprep.subr.bf16.mxu0 %v1747_v54  ;;  %876 = vmatprep.subr.bf16.mxu1 %v1749_v55  ;;  %v264_v55 = vld [vmem:[%s2109_s24 + $0x68] sm:$0xff] }
  0x43   : > { %v307_v53 = vsel %vm284_vm0, %v304_v44, %v306_v51  ;;  %v309_v54 = vsel %vm284_vm0, %v306_v51, %v308_v52  ;;  %v310_v58 = vrot.slane %v264_v55, 1 }
  0x44   : > { %v350_v57 = vpack.c.bf16 %v309_v54, %v307_v53 }
  0x45   : > { %764 = vmatpush2.bf16.msra.mxu0 %v1751_v56  ;;  %877 = vmatpush2.bf16.msra.mxu1 %v1752_v59  ;;  %v347_v56 = vpack.c.bf16 %v260_v39, %v259_v32  ;;  %v311_v59 = vsel %vm284_vm0, %v308_v52, %v310_v58 }
  0x46   : > { %765 = vmatprep.subr.bf16.mxu0 %v1753_v60  ;;  %878 = vmatprep.subr.bf16.mxu1 %v1755_v61  ;;  %v313_v60 = vsel %vm284_vm0, %v310_v58, %v312_v6  ;;  %v349_v61 = vpack.c.bf16 %v262_v47, %v261_v40 }
  0x47   : > { %v352_v62 = vpack.c.bf16 %v313_v60, %v311_v59 }
  0x49   : > { %766 = vmatpush2.bf16.msra.mxu0 %v1757_v1  ;;  %879 = vmatpush2.bf16.msra.mxu1 %v1758_v2  ;;  %v351_v1 = vpack.c.bf16 %v264_v55, %v263_v48  ;;  %v353_v2 = vpack.c.bf16 %v2166_v0, %v2163_v63 }
  0x4a   : > { %767 = vmatprep.subr.bf16.mxu0 %v1759_v4  ;;  %880 = vmatprep.subr.bf16.mxu1 %v1761_v5  ;;  %v1776_v4 = vld [vmem:[%s2436_s3 + $0x44] ss:$8 sps:$4 sm:$0xff]  }
  0x4d   : > { %768 = vmatpush2.bf16.msra.mxu0 %v1763_v12  ;;  %881 = vmatpush2.bf16.msra.mxu1 %v1764_v13 }
  0x4e   : > { %769 = vmatprep.subr.bf16.mxu0 %v1765_v15  ;;  %882 = vmatprep.subr.bf16.mxu1 %v1767_v16 }
  0x51   : > { %770 = vmatpush2.bf16.msra.mxu0 %v1769_v19  ;;  %883 = vmatpush2.bf16.msra.mxu1 %v1770_v20 }
  0x54   : > { %772 = vmatmul.mubr.bf16.vlgmr.msra.gmra.mxu0 %v339_v25  ;;  %885 = vmatmul.mubr.bf16.vlgmr.msra.gmra.mxu1 %v339_v25 }
  0x55   : > { %781 = vmatprep.mubr.bf16.mxu0 %v342_v26  ;;  %894 = vmatprep.mubr.bf16.mxu1 %v342_v26 }
  0x5c   : > { %782 = vmatmul.mubr.bf16.gmra.mxu0 %v341_v33  ;;  %895 = vmatmul.mubr.bf16.gmra.mxu1 %v341_v33 }
  0x5d   : > { %791 = vmatprep.mubr.bf16.mxu0 %v344_v34  ;;  %904 = vmatprep.mubr.bf16.mxu1 %v344_v34 }
  0x64   : > { %792 = vmatmul.mubr.bf16.gmra.mxu0 %v343_v41  ;;  %905 = vmatmul.mubr.bf16.gmra.mxu1 %v343_v41 }
  0x65   : > { %801 = vmatprep.mubr.bf16.mxu0 %v346_v42  ;;  %914 = vmatprep.mubr.bf16.mxu1 %v346_v42 }
  0x6c   : > { %802 = vmatmul.mubr.bf16.gmra.mxu0 %v345_v49  ;;  %915 = vmatmul.mubr.bf16.gmra.mxu1 %v345_v49 }
  0x6d   : > { %811 = vmatprep.mubr.bf16.mxu0 %v348_v50  ;;  %924 = vmatprep.mubr.bf16.mxu1 %v348_v50 }
  0x74   : > { %812 = vmatmul.mubr.bf16.gmra.mxu0 %v347_v56  ;;  %925 = vmatmul.mubr.bf16.gmra.mxu1 %v347_v56 }
  0x75   : > { %821 = vmatprep.mubr.bf16.mxu0 %v350_v57  ;;  %934 = vmatprep.mubr.bf16.mxu1 %v350_v57 }
  0x7c   : > { %822 = vmatmul.mubr.bf16.gmra.mxu0 %v349_v61  ;;  %935 = vmatmul.mubr.bf16.gmra.mxu1 %v349_v61 }
  0x7d   : > { %831 = vmatprep.mubr.bf16.mxu0 %v352_v62  ;;  %944 = vmatprep.mubr.bf16.mxu1 %v352_v62 }
  0x84   : > { %832 = vmatmul.mubr.bf16.gmra.mxu0 %v351_v1  ;;  %945 = vmatmul.mubr.bf16.gmra.mxu1 %v351_v1 }
  0x85   : > { %841 = vmatprep.mubr.bf16.mxu0 %v2194_v14  ;;  %954 = vmatprep.mubr.bf16.mxu1 %v2194_v14 }
  0x8c   : > { %842 = vmatmul.mubr.bf16.gmra.mxu0 %v353_v2  ;;  %955 = vmatmul.mubr.bf16.gmra.mxu1 %v353_v2 }
  0x8d   : > { %1205 = vmatprep.mubr.bf16.mxu0 %v1773_v3  ;;  %1237 = vmatprep.mubr.bf16.mxu1 %v1776_v4 }
 0x114   : > { %v773_v5 = vpop.f32.mrf.mxu0  ;;  %v886_v6 = vpop.f32.mrf.mxu1 }
 0x115   : > { %v965_v7 = vmul.f32 %v773_v5, %v773_v5  ;;  %v997_v8 = vmul.f32 %v886_v6, %v886_v6 }
 0x116   : > { %v775_v9 = vpop.f32.mrf.mxu0  ;;  %v888_v10 = vpop.f32.mrf.mxu1 }
 0x117   : > { %v1029_v11 = vadd.f32 %v997_v8, %v965_v7  ;;  %v966_v63 = vmul.f32 %v775_v9, %v775_v9  ;;  %v998_v0 = vmul.f32 %v888_v10, %v888_v10 }
 0x118   : > { %v777_v12 = vpop.f32.mrf.mxu0  ;;  %v890_v13 = vpop.f32.mrf.mxu1 }
 0x119   : > { %v1030_v14 = vadd.f32 %v998_v0, %v966_v63  ;;  %v967_v15 = vmul.f32 %v777_v12, %v777_v12  ;;  %v999_v16 = vmul.f32 %v890_v13, %v890_v13 }
 0x11a   : > { %v779_v17 = vpop.f32.mrf.mxu0  ;;  %v892_v18 = vpop.f32.mrf.mxu1 }
 0x11b   : > { %v1031_v19 = vadd.f32 %v999_v16, %v967_v15  ;;  %v968_v20 = vmul.f32 %v779_v17, %v779_v17  ;;  %v1000_v21 = vmul.f32 %v892_v18, %v892_v18 }
 0x11c   : > { %v783_v22 = vpop.f32.mrf.mxu0  ;;  %v896_v23 = vpop.f32.mrf.mxu1 }
 0x11d   : > { %v2244_v24 = vpack.c.bf16 %v1031_v19, %v1029_v11  ;;  %v1032_v25 = vadd.f32 %v1000_v21, %v968_v20  ;;  %v969_v26 = vmul.f32 %v783_v22, %v783_v22  ;;  %v1001_v27 = vmul.f32 %v896_v23, %v896_v23 }
 0x11e   : > { %v785_v28 = vpop.f32.mrf.mxu0  ;;  %v898_v29 = vpop.f32.mrf.mxu1 }
 0x11f   : > { %v1033_v30 = vadd.f32 %v1001_v27, %v969_v26  ;;  %v970_v31 = vmul.f32 %v785_v28, %v785_v28  ;;  %v1002_v32 = vmul.f32 %v898_v29, %v898_v29  ;;  %v2246_v33 = vpack.c.bf16 %v1032_v25, %v1030_v14 }
 0x120   : > { %v787_v34 = vpop.f32.mrf.mxu0  ;;  %v900_v35 = vpop.f32.mrf.mxu1 }
 0x121   : > { %v1034_v36 = vadd.f32 %v1002_v32, %v970_v31  ;;  %v971_v37 = vmul.f32 %v787_v34, %v787_v34  ;;  %v1003_v38 = vmul.f32 %v900_v35, %v900_v35 }
 0x122   : > { %v789_v39 = vpop.f32.mrf.mxu0  ;;  %v902_v40 = vpop.f32.mrf.mxu1 }
 0x123   : > { %v1035_v41 = vadd.f32 %v1003_v38, %v971_v37  ;;  %v972_v42 = vmul.f32 %v789_v39, %v789_v39  ;;  %v1004_v43 = vmul.f32 %v902_v40, %v902_v40 }
 0x124   : > { %v793_v44 = vpop.f32.mrf.mxu0  ;;  %v906_v45 = vpop.f32.mrf.mxu1 }
 0x125   : > { %v2248_v46 = vpack.c.bf16 %v1035_v41, %v1033_v30  ;;  %v1036_v47 = vadd.f32 %v1004_v43, %v972_v42  ;;  %v973_v48 = vmul.f32 %v793_v44, %v793_v44  ;;  %v1005_v49 = vmul.f32 %v906_v45, %v906_v45 }
 0x126   : > { %v795_v50 = vpop.f32.mrf.mxu0  ;;  %v908_v51 = vpop.f32.mrf.mxu1 }
 0x127   : > { %v1037_v52 = vadd.f32 %v1005_v49, %v973_v48  ;;  %v974_v53 = vmul.f32 %v795_v50, %v795_v50  ;;  %v1006_v54 = vmul.f32 %v908_v51, %v908_v51  ;;  %v2250_v55 = vpack.c.bf16 %v1036_v47, %v1034_v36 }
 0x128   : > { %v797_v56 = vpop.f32.mrf.mxu0  ;;  %v910_v57 = vpop.f32.mrf.mxu1 }
 0x129   : > { %v1038_v58 = vadd.f32 %v1006_v54, %v974_v53  ;;  %v975_v59 = vmul.f32 %v797_v56, %v797_v56  ;;  %v1007_v60 = vmul.f32 %v910_v57, %v910_v57 }
 0x12a   : > { %v799_v61 = vpop.f32.mrf.mxu0  ;;  %v912_v62 = vpop.f32.mrf.mxu1 }
 0x12b   : > { %v1039_v1 = vadd.f32 %v1007_v60, %v975_v59  ;;  %v976_v2 = vmul.f32 %v799_v61, %v799_v61  ;;  %v1008_v3 = vmul.f32 %v912_v62, %v912_v62 }
 0x12c   : > { %v803_v4 = vpop.f32.mrf.mxu0  ;;  %v916_v5 = vpop.f32.mrf.mxu1 }
 0x12d   : > { %v2252_v6 = vpack.c.bf16 %v1039_v1, %v1037_v52  ;;  %v1040_v7 = vadd.f32 %v1008_v3, %v976_v2  ;;  %v977_v8 = vmul.f32 %v803_v4, %v803_v4  ;;  %v1009_v9 = vmul.f32 %v916_v5, %v916_v5 }
 0x12e   : > { %v2254_v10 = vpop.f32.mrf.mxu0  ;;  %v2256_v11 = vpop.f32.mrf.mxu1 }
 0x12f   : > { %v1041_v63 = vadd.f32 %v1009_v9, %v977_v8  ;;  %v2258_v0 = vpack.c.bf16 %v1040_v7, %v1038_v58 }
 0x130   : > { %v807_v12 = vpop.f32.mrf.mxu0  ;;  %v920_v13 = vpop.f32.mrf.mxu1 }
 0x131   : > { %v979_v14 = vmul.f32 %v807_v12, %v807_v12  ;;  %v1011_v15 = vmul.f32 %v920_v13, %v920_v13 }
 0x132   : > { %v2260_v16 = vpop.f32.mrf.mxu0  ;;  %v2262_v17 = vpop.f32.mrf.mxu1 }
 0x133   : > { %v1043_v18 = vadd.f32 %v1011_v15, %v979_v14 }
 0x134   : > { %v2264_v19 = vpop.f32.mrf.mxu0  ;;  %v2266_v20 = vpop.f32.mrf.mxu1 }
 0x135   : > { %v2268_v21 = vpack.c.bf16 %v1043_v18, %v1041_v63 }
 0x136   : > { %v2270_v22 = vpop.f32.mrf.mxu0  ;;  %v2272_v23 = vpop.f32.mrf.mxu1 }
 0x138   : > { %v2274_v25 = vpop.f32.mrf.mxu0  ;;  %v2276_v26 = vpop.f32.mrf.mxu1 }
 0x13a   : > { %v2278_v27 = vpop.f32.mrf.mxu0  ;;  %v2280_v28 = vpop.f32.mrf.mxu1 }
 0x13c   : > { %v2282_v29 = vpop.f32.mrf.mxu0  ;;  %v2284_v30 = vpop.f32.mrf.mxu1 }
 0x13e   : > { %v825_v31 = vpop.f32.mrf.mxu0  ;;  %v938_v32 = vpop.f32.mrf.mxu1 }
 0x140   : > { %v827_v34 = vpop.f32.mrf.mxu0  ;;  %v940_v35 = vpop.f32.mrf.mxu1 }
 0x142   : > { %v829_v36 = vpop.f32.mrf.mxu0  ;;  %v942_v37 = vpop.f32.mrf.mxu1 }
 0x144   : > { %v833_v38 = vpop.f32.mrf.mxu0  ;;  %v946_v39 = vpop.f32.mrf.mxu1 }
 0x146   : > { %v835_v40 = vpop.f32.mrf.mxu0  ;;  %v948_v41 = vpop.f32.mrf.mxu1 }
 0x147   : > { %v990_v2 = vmul.f32 %v835_v40, %v835_v40  ;;  %v1022_v3 = vmul.f32 %v948_v41, %v948_v41  ;;  %v1021_v40 = vmul.f32 %v946_v39, %v946_v39  ;;  %v986_v41 = vmul.f32 %v825_v31, %v825_v31 }
 0x148   : > { %v837_v42 = vpop.f32.mrf.mxu0  ;;  %v950_v43 = vpop.f32.mrf.mxu1  ;;  %v985_v31 = vmul.f32 %v2282_v29, %v2282_v29  ;;  %v983_v29 = vmul.f32 %v2274_v25, %v2274_v25  ;;  %v978_v25 = vmul.f32 %v2254_v10, %v2254_v10  ;;  %v1782_v10 = vld [vmem:[%s2436_s3 + $0x50] ss:$8 sps:$4 sm:$0xff]  }
 0x149   : > { %v1054_v13 = vadd.f32 %v1022_v3, %v990_v2  ;;  %v991_v15 = vmul.f32 %v837_v42, %v837_v42  ;;  %v1023_v18 = vmul.f32 %v950_v43, %v950_v43  ;;  %v987_v42 = vmul.f32 %v827_v34, %v827_v34 }
 0x14a   : > { %v839_v44 = vpop.f32.mrf.mxu0  ;;  %v952_v45 = vpop.f32.mrf.mxu1  ;;  %v1019_v43 = vmul.f32 %v940_v35, %v940_v35  ;;  %v982_v34 = vmul.f32 %v2270_v22, %v2270_v22  ;;  %v1014_v35 = vmul.f32 %v2272_v23, %v2272_v23  ;;  %v1012_v22 = vmul.f32 %v2262_v17, %v2262_v17 }
 0x14b   : > { %v992_v51 = vmul.f32 %v839_v44, %v839_v44  ;;  %v1024_v52 = vmul.f32 %v952_v45, %v952_v45  ;;  %v988_v45 = vmul.f32 %v829_v36, %v829_v36  ;;  %v984_v36 = vmul.f32 %v2278_v27, %v2278_v27 }
 0x14c   : > { %v843_v47 = vpop.f32.mrf.mxu0  ;;  %v956_v48 = vpop.f32.mrf.mxu1  ;;  %v1051_v27 = vadd.f32 %v1019_v43, %v987_v42 }
 0x14d   : > { %v993_v60 = vmul.f32 %v843_v47, %v843_v47  ;;  %v1025_v61 = vmul.f32 %v956_v48, %v956_v48  ;;  %v1056_v8 = vadd.f32 %v1024_v52, %v992_v51  ;;  %v989_v48 = vmul.f32 %v833_v38, %v833_v38 }
 0x14e   : > { %v845_v49 = vpop.f32.mrf.mxu0  ;;  %v958_v50 = vpop.f32.mrf.mxu1  ;;  %v1055_v51 = vadd.f32 %v1023_v18, %v991_v15 }
 0x14f   : > { %v994_v56 = vmul.f32 %v845_v49, %v845_v49  ;;  %v1026_v57 = vmul.f32 %v958_v50, %v958_v50  ;;  %v1057_v12 = vadd.f32 %v1025_v61, %v993_v60  ;;  %v1020_v49 = vmul.f32 %v942_v37, %v942_v37 }
 0x150   : > { %v847_v53 = vpop.f32.mrf.mxu0  ;;  %v960_v54 = vpop.f32.mrf.mxu1  ;;  %v1074_v47 = vpack.c.bf16 %v1056_v8, %v1054_v13  ;;  %v1018_v50 = vmul.f32 %v938_v32, %v938_v32  ;;  %v1016_v37 = vmul.f32 %v2280_v28, %v2280_v28  ;;  %v1017_v32 = vmul.f32 %v2284_v30, %v2284_v30 }
 0x151   : > { %v995_v58 = vmul.f32 %v847_v53, %v847_v53  ;;  %v1027_v59 = vmul.f32 %v960_v54, %v960_v54  ;;  %v1058_v9 = vadd.f32 %v1026_v57, %v994_v56  ;;  %v1052_v52 = vadd.f32 %v1020_v49, %v988_v45 }
 0x152   : > { %v849_v62 = vpop.f32.mrf.mxu0  ;;  %v962_v1 = vpop.f32.mrf.mxu1  ;;  %v1053_v53 = vadd.f32 %v1021_v40, %v989_v48  ;;  %v1050_v54 = vadd.f32 %v1018_v50, %v986_v41  ;;  %v1048_v39 = vadd.f32 %v1016_v37, %v984_v36  ;;  %v1049_v28 = vadd.f32 %v1017_v32, %v985_v31 }
 0x153   : > { %v996_v4 = vmul.f32 %v849_v62, %v849_v62  ;;  %v1028_v5 = vmul.f32 %v962_v1, %v962_v1  ;;  %v1059_v7 = vadd.f32 %v1027_v59, %v995_v58  ;;  %v1046_v57 = vadd.f32 %v1014_v35, %v982_v34 }
 0x154   : > { %v1073_v56 = vpack.c.bf16 %v1055_v51, %v1053_v53  ;;  %v1072_v38 = vpack.c.bf16 %v1052_v52, %v1050_v54  ;;  %v1015_v30 = vmul.f32 %v2276_v26, %v2276_v26  ;;  %v1071_v58 = vpack.c.bf16 %v1051_v27, %v1049_v28 }
 0x155   : > { %v1060_v63 = vadd.f32 %v1028_v5, %v996_v4  ;;  %v1075_v44 = vpack.c.bf16 %v1059_v7, %v1057_v12  ;;  %v980_v59 = vmul.f32 %v2260_v16, %v2260_v16  ;;  %v1070_v23 = vpack.c.bf16 %v1048_v39, %v1046_v57  ;;  %v1791_v4 = vld [vmem:[%s2436_s3 + $0x74] ss:$8 sps:$4 sm:$0xff]   ;;  %v1793_v5 = vld [vmem:[%s2436_s3 + $0x30] ss:$8 sps:$4 sm:$0xff]  }
 0x156   : > { %v981_v60 = vmul.f32 %v2264_v19, %v2264_v19  ;;  %v1013_v61 = vmul.f32 %v2266_v20, %v2266_v20  ;;  %v1010_v26 = vmul.f32 %v2256_v11, %v2256_v11  ;;  %v1047_v16 = vadd.f32 %v1015_v30, %v983_v29  ;;  %v1783_v11 = vld [vmem:[%s2436_s3 + $0x24] ss:$8 sps:$4 sm:$0xff]   ;;  %v1787_v19 = vld [vmem:[%s2436_s3 + $0x20] ss:$8 sps:$4 sm:$0xff]   ;;  %v1794_v7 = vld [vmem:[%s2436_s3 + $0x70] ss:$8 sps:$4 sm:$0xff]  }
 0x157   : > { %v1076_v14 = vpack.c.bf16 %v1060_v63, %v1058_v9  ;;  %v1044_v62 = vadd.f32 %v1012_v22, %v980_v59  ;;  %v1788_v20 = vld [vmem:[%s2436_s3 + $0x60] ss:$8 sps:$4 sm:$0xff]  }
 0x158   : > { %v1045_v17 = vadd.f32 %v1013_v61, %v981_v60  ;;  %v1042_v1 = vadd.f32 %v1010_v26, %v978_v25 }
 0x159   : > { %1173 = vmatprep.subr.bf16.mxu0 %v1076_v14  ;;  %1603 = vmatprep.subr.bf16.mxu1 %v1076_v14 }
 0x15a   : > { %1174 = vmatpush1.bf16.xpose.msra.mxu0 %v1075_v44  ;;  %1611 = vmatpush1.bf16.xpose.msra.mxu1 %v1075_v44  ;;  %v1069_v2 = vpack.c.bf16 %v1047_v16, %v1045_v17  ;;  %v1068_v3 = vpack.c.bf16 %v1044_v62, %v1042_v1 }
 0x15b   : > { %1175 = vmatprep.subr.bf16.mxu0 %v1074_v47  ;;  %1604 = vmatprep.subr.bf16.mxu1 %v1074_v47 }
 0x162   : > { %1176 = vmatpush1.bf16.xpose.msra.mxu0 %v1073_v56  ;;  %1612 = vmatpush1.bf16.xpose.msra.mxu1 %v1073_v56 }
 0x163   : > { %1177 = vmatprep.subr.bf16.mxu0 %v1072_v38  ;;  %1605 = vmatprep.subr.bf16.mxu1 %v1072_v38 }
 0x16a   : > { %1178 = vmatpush1.bf16.xpose.msra.mxu0 %v1071_v58  ;;  %1613 = vmatpush1.bf16.xpose.msra.mxu1 %v1071_v58 }
 0x16b   : > { %1179 = vmatprep.subr.bf16.mxu0 %v1070_v23  ;;  %1606 = vmatprep.subr.bf16.mxu1 %v1070_v23 }
 0x172   : > { %1180 = vmatpush1.bf16.xpose.msra.mxu0 %v1069_v2  ;;  %1614 = vmatpush1.bf16.xpose.msra.mxu1 %v1069_v2 }
 0x173   : > { %1181 = vmatprep.subr.bf16.mxu0 %v1068_v3  ;;  %1607 = vmatprep.subr.bf16.mxu1 %v1068_v3 }
 0x17a   : > { %1182 = vmatpush1.bf16.xpose.msra.mxu0 %v2268_v21  ;;  %1615 = vmatpush1.bf16.xpose.msra.mxu1 %v2268_v21  ;;  %v1789_v21 = vld [vmem:[%s2436_s3 + $0x34] ss:$8 sps:$4 sm:$0xff]  }
 0x17b   : > { %1183 = vmatprep.subr.bf16.mxu0 %v2258_v0  ;;  %1608 = vmatprep.subr.bf16.mxu1 %v2258_v0  ;;  %v1785_v0 = vld [vmem:[%s2436_s3 + $0x64] ss:$8 sps:$4 sm:$0xff]  }
 0x182   : > { %1184 = vmatpush1.bf16.xpose.msra.mxu0 %v2252_v6  ;;  %1616 = vmatpush1.bf16.xpose.msra.mxu1 %v2252_v6  ;;  %v1771_v6 = vld [vmem:[%s2436_s3] ss:$8 sps:$4 sm:$0xff]  }
 0x183   : > { %1185 = vmatprep.subr.bf16.mxu0 %v2250_v55  ;;  %1609 = vmatprep.subr.bf16.mxu1 %v2250_v55  ;;  %v1774_v55 = vld [vmem:[%s2436_s3 + $0x40] ss:$8 sps:$4 sm:$0xff]  }
 0x18a   : > { %1186 = vmatpush1.bf16.xpose.msra.mxu0 %v2248_v46  ;;  %1617 = vmatpush1.bf16.xpose.msra.mxu1 %v2248_v46  ;;  %v1777_v46 = vld [vmem:[%s2436_s3 + $0x14] ss:$8 sps:$4 sm:$0xff]  }
 0x18b   : > { %1187 = vmatprep.subr.bf16.mxu0 %v2246_v33  ;;  %1610 = vmatprep.subr.bf16.mxu1 %v2246_v33  ;;  %v1779_v33 = vld [vmem:[%s2436_s3 + $0x54] ss:$8 sps:$4 sm:$0xff]  }
 0x192   : > { %1188 = vmatpush1.bf16.xpose.msra.mxu0 %v2244_v24  ;;  %1618 = vmatpush1.bf16.xpose.msra.mxu1 %v2244_v24  ;;  %v1781_v24 = vld [vmem:[%s2436_s3 + $0x10] ss:$8 sps:$4 sm:$0xff]  }
 0x199   : > { %1206 = vmatmul.mubr.bf16.vlgmr.msra.gmra.mxu0 %v1771_v6  ;;  %1238 = vmatmul.mubr.bf16.vlgmr.msra.gmra.mxu1 %v1774_v55 }
 0x19a   : > { %1213 = vmatprep.mubr.bf16.mxu0 %v1777_v46  ;;  %1245 = vmatprep.mubr.bf16.mxu1 %v1779_v33 }
 0x1a1   : > { %1214 = vmatmul.mubr.bf16.gmra.mxu0 %v1781_v24  ;;  %1246 = vmatmul.mubr.bf16.gmra.mxu1 %v1782_v10 }
 0x1a2   : > { %1221 = vmatprep.mubr.bf16.mxu0 %v1783_v11  ;;  %1253 = vmatprep.mubr.bf16.mxu1 %v1785_v0 }
 0x1a9   : > { %1222 = vmatmul.mubr.bf16.gmra.mxu0 %v1787_v19  ;;  %1254 = vmatmul.mubr.bf16.gmra.mxu1 %v1788_v20 }
 0x1aa   : > { %1229 = vmatprep.mubr.bf16.mxu0 %v1789_v21  ;;  %1261 = vmatprep.mubr.bf16.mxu1 %v1791_v4 }
 0x1b1   : > { %1230 = vmatmul.mubr.bf16.gmra.mxu0 %v1793_v5  ;;  %1262 = vmatmul.mubr.bf16.gmra.mxu1 %v1794_v7 }
 0x259   : > { %v1207_v8 = vpop.f32.mrf.mxu0  ;;  %v1239_v9 = vpop.f32.mrf.mxu1 }
 0x25a   : > { %v1208_v63 = vadd.f32 1e-14, %v1207_v8  ;;  %v1240_v12 = vadd.f32 1e-14, %v1239_v9 }
 0x25b   : > { %v1209_v13 = vpop.f32.mrf.mxu0  ;;  %v1241_v14 = vpop.f32.mrf.mxu1 }
 0x25c   : > { %1795 = vlog2.f32 %v1208_v63 }
 0x25d   : > { %1797 = vlog2.f32 %v1240_v12  ;;  %v1210_v15 = vpop.f32.mrf.mxu0  ;;  %v1242_v18 = vpop.f32.mrf.mxu1 }
 0x25e   : > { %v1211_v44 = vadd.f32 1e-14, %v1210_v15  ;;  %v1243_v45 = vadd.f32 1e-14, %v1242_v18 }
 0x25f   : > { %v1212_v49 = vpop.f32.mrf.mxu0  ;;  %v1244_v47 = vpop.f32.mrf.mxu1 }
 0x260   : > { %1799 = vlog2.f32 %v1211_v44 }
 0x261   : > { %1801 = vlog2.f32 %v1243_v45  ;;  %v1215_v48 = vpop.f32.mrf.mxu0  ;;  %v1247_v40 = vpop.f32.mrf.mxu1 }
 0x262   : > { %v1216_v41 = vadd.f32 1e-14, %v1215_v48  ;;  %v1248_v50 = vadd.f32 1e-14, %v1247_v40 }
 0x263   : > { %v1217_v51 = vpop.f32.mrf.mxu0  ;;  %v1249_v52 = vpop.f32.mrf.mxu1 }
 0x264   : > { %1803 = vlog2.f32 %v1216_v41 }
 0x265   : > { %1805 = vlog2.f32 %v1248_v50  ;;  %v1218_v53 = vpop.f32.mrf.mxu0  ;;  %v1250_v54 = vpop.f32.mrf.mxu1 }
 0x266   : > { %v1219_v42 = vadd.f32 1e-14, %v1218_v53  ;;  %v1251_v43 = vadd.f32 1e-14, %v1250_v54 }
 0x267   : > { %v1220_v56 = vpop.f32.mrf.mxu0  ;;  %v1252_v36 = vpop.f32.mrf.mxu1 }
 0x268   : > { %1807 = vlog2.f32 %v1219_v42 }
 0x269   : > { %v1796_v37 = vpop.eup %1795  ;;  %1809 = vlog2.f32 %v1251_v43  ;;  %v1223_v38 = vpop.f32.mrf.mxu0 }
 0x26a   : > { %v1255_v31 = vpop.f32.mrf.mxu1  ;;  %v1798_v32 = vpop.eup %1797  ;;  %v1271_v34 = vmul.f32 0.6931472, %v1796_v37  ;;  %v1224_v35 = vadd.f32 1e-14, %v1223_v38 }
 0x26b   : > { %v1256_v27 = vadd.f32 1e-14, %v1255_v31  ;;  %v1287_v39 = vmul.f32 0.6931472, %v1798_v32  ;;  %v1225_v28 = vpop.f32.mrf.mxu0 }
 0x26c   : > { %v1257_v57 = vpop.f32.mrf.mxu1  ;;  %1302 = vst [vmem:[%s2371_s15] sm:$0xff] %v1271_v34  ;;  %1811 = vlog2.f32 %v1224_v35 }
 0x26d   : > { %v1800_v29 = vpop.eup %1799  ;;  %1310 = vst [vmem:[%s2371_s15 + $0x40] sm:$0xff] %v1287_v39  ;;  %1813 = vlog2.f32 %v1256_v27  ;;  %v1226_v30 = vpop.f32.mrf.mxu0 }
 0x26e   : > { %v1258_v58 = vpop.f32.mrf.mxu1  ;;  %v1802_v59 = vpop.eup %1801  ;;  %v1273_v22 = vmul.f32 0.6931472, %v1800_v29  ;;  %v1227_v23 = vadd.f32 1e-14, %v1226_v30 }
 0x26f   : > { %v1259_v60 = vadd.f32 1e-14, %v1258_v58  ;;  %v1289_v61 = vmul.f32 0.6931472, %v1802_v59  ;;  %v1228_v25 = vpop.f32.mrf.mxu0 }
 0x270   : > { %v1260_v26 = vpop.f32.mrf.mxu1  ;;  %1303 = vst [vmem:[%s2371_s15 + $0x8] sm:$0xff] %v1273_v22  ;;  %1815 = vlog2.f32 %v1227_v23 }
 0x271   : > { %v1804_v16 = vpop.eup %1803  ;;  %1311 = vst [vmem:[%s2371_s15 + $0x48] sm:$0xff] %v1289_v61  ;;  %1817 = vlog2.f32 %v1259_v60  ;;  %v1231_v62 = vpop.f32.mrf.mxu0 }
 0x272   : > { %v1263_v17 = vpop.f32.mrf.mxu1  ;;  %v1806_v1 = vpop.eup %1805  ;;  %v1275_v2 = vmul.f32 0.6931472, %v1804_v16  ;;  %v1232_v3 = vadd.f32 1e-14, %v1231_v62 }
 0x273   : > { %v1264_v6 = vadd.f32 1e-14, %v1263_v17  ;;  %v1291_v55 = vmul.f32 0.6931472, %v1806_v1  ;;  %v1233_v46 = vpop.f32.mrf.mxu0  ;;  %v1387_v51 = vld [vmem:[%s2371_s15] sm:$0xff] (%p1954_p5) }
 0x274   : > { %v1265_v33 = vpop.f32.mrf.mxu1  ;;  %1304 = vst [vmem:[%s2371_s15 + $0x10] sm:$0xff] %v1275_v2  ;;  %1819 = vlog2.f32 %v1232_v3  ;;  %v1403_v37 = vld [vmem:[%s2371_s15 + $0x40] sm:$0xff] (%p1954_p5)  ;;  %1388 = vst [vmem:[%s1328_s13] sm:$0xff] (%p1954_p5), %v1387_v51 }
 0x275   : > { %v1808_v24 = vpop.eup %1807  ;;  %1312 = vst [vmem:[%s2371_s15 + $0x50] sm:$0xff] %v1291_v55  ;;  %1821 = vlog2.f32 %v1264_v6  ;;  %v1234_v10 = vpop.f32.mrf.mxu0  ;;  %1404 = vst [vmem:[%s1328_s13 + $0x80] sm:$0xff] (%p1954_p5), %v1403_v37 }
 0x276   : > { %v1266_v11 = vpop.f32.mrf.mxu1  ;;  %v1810_v0 = vpop.eup %1809  ;;  %v1277_v19 = vmul.f32 0.6931472, %v1808_v24  ;;  %v1235_v20 = vadd.f32 1e-14, %v1234_v10 }
 0x277   : > { %v1267_v21 = vadd.f32 1e-14, %v1266_v11  ;;  %v1293_v4 = vmul.f32 0.6931472, %v1810_v0  ;;  %v1236_v5 = vpop.f32.mrf.mxu0  ;;  %v1389_v52 = vld [vmem:[%s2371_s15 + $0x8] sm:$0xff] (%p1954_p5) }
 0x278   : > { %v1268_v7 = vpop.f32.mrf.mxu1  ;;  %1305 = vst [vmem:[%s2371_s15 + $0x18] sm:$0xff] %v1277_v19  ;;  %1823 = vlog2.f32 %v1235_v20  ;;  %v1405_v38 = vld [vmem:[%s2371_s15 + $0x48] sm:$0xff] (%p1954_p5)  ;;  %1390 = vst [vmem:[%s1328_s13 + $0x10] sm:$0xff] (%p1954_p5), %v1389_v52 }
 0x279   : > { %v1812_v8 = vpop.eup %1811  ;;  %1313 = vst [vmem:[%s2371_s15 + $0x58] sm:$0xff] %v1293_v4  ;;  %1825 = vlog2.f32 %v1267_v21  ;;  %1406 = vst [vmem:[%s1328_s13 + $0x90] sm:$0xff] (%p1954_p5), %v1405_v38 }
 0x27a   : > { %v1814_v9 = vpop.eup %1813  ;;  %v1279_v63 = vmul.f32 0.6931472, %v1812_v8 }
 0x27b   : > { %v1295_v12 = vmul.f32 0.6931472, %v1814_v9  ;;  %v1391_v53 = vld [vmem:[%s2371_s15 + $0x10] sm:$0xff] (%p1954_p5) }
 0x27c   : > { %1306 = vst [vmem:[%s2371_s15 + $0x20] sm:$0xff] %v1279_v63  ;;  %v1407_v31 = vld [vmem:[%s2371_s15 + $0x50] sm:$0xff] (%p1954_p5)  ;;  %1392 = vst [vmem:[%s1328_s13 + $0x20] sm:$0xff] (%p1954_p5), %v1391_v53 }
 0x27d   : > { %v1816_v13 = vpop.eup %1815  ;;  %1314 = vst [vmem:[%s2371_s15 + $0x60] sm:$0xff] %v1295_v12  ;;  %1408 = vst [vmem:[%s1328_s13 + $0xa0] sm:$0xff] (%p1954_p5), %v1407_v31 }
 0x27e   : > { %v1818_v14 = vpop.eup %1817  ;;  %v1281_v15 = vmul.f32 0.6931472, %v1816_v13 }
 0x27f   : > { %v1297_v18 = vmul.f32 0.6931472, %v1818_v14  ;;  %v1393_v54 = vld [vmem:[%s2371_s15 + $0x18] sm:$0xff] (%p1954_p5) }
 0x280   : > { %1307 = vst [vmem:[%s2371_s15 + $0x28] sm:$0xff] %v1281_v15  ;;  %v1409_v32 = vld [vmem:[%s2371_s15 + $0x58] sm:$0xff] (%p1954_p5)  ;;  %1394 = vst [vmem:[%s1328_s13 + $0x30] sm:$0xff] (%p1954_p5), %v1393_v54 }
 0x281   : > { %v1820_v44 = vpop.eup %1819  ;;  %1315 = vst [vmem:[%s2371_s15 + $0x68] sm:$0xff] %v1297_v18  ;;  %1410 = vst [vmem:[%s1328_s13 + $0xb0] sm:$0xff] (%p1954_p5), %v1409_v32 }
 0x282   : > { %v1822_v45 = vpop.eup %1821  ;;  %v1283_v49 = vmul.f32 0.6931472, %v1820_v44 }
 0x283   : > { %v1299_v47 = vmul.f32 0.6931472, %v1822_v45  ;;  %v1395_v42 = vld [vmem:[%s2371_s15 + $0x20] sm:$0xff] (%p1954_p5) }
 0x284   : > { %1308 = vst [vmem:[%s2371_s15 + $0x30] sm:$0xff] %v1283_v49  ;;  %1396 = vst [vmem:[%s1328_s13 + $0x40] sm:$0xff] (%p1954_p5), %v1395_v42  ;;  %v1411_v34 = vld [vmem:[%s2371_s15 + $0x60] sm:$0xff] (%p1954_p5) }
 0x285   : > { %v1824_v48 = vpop.eup %1823  ;;  %1316 = vst [vmem:[%s2371_s15 + $0x70] sm:$0xff] %v1299_v47  ;;  %1324 = sbr.rel (!%p1954_p5) target bundleno = 658 (0x292), region = 40  ;;  %1412 = vst [vmem:[%s1328_s13 + $0xc0] sm:$0xff] (%p1954_p5), %v1411_v34 }
 0x286   : > { %v1826_v40 = vpop.eup %1825  ;;  %v1285_v41 = vmul.f32 0.6931472, %v1824_v48 }
 0x287   : > { %v1301_v50 = vmul.f32 0.6931472, %v1826_v40  ;;  %v1397_v43 = vld [vmem:[%s2371_s15 + $0x28] sm:$0xff] (%p1954_p5) }
 0x288   : > { %1309 = vst [vmem:[%s2371_s15 + $0x38] sm:$0xff] %v1285_v41  ;;  %1398 = vst [vmem:[%s1328_s13 + $0x50] sm:$0xff] (%p1954_p5), %v1397_v43  ;;  %v1413_v35 = vld [vmem:[%s2371_s15 + $0x68] sm:$0xff] (%p1954_p5) }
 0x289   : > { %1317 = vst [vmem:[%s2371_s15 + $0x78] sm:$0xff] %v1301_v50  ;;  %1414 = vst [vmem:[%s1328_s13 + $0xd0] sm:$0xff] (%p1954_p5), %v1413_v35 }
 0x28b   : > { %v1399_v56 = vld [vmem:[%s2371_s15 + $0x30] sm:$0xff] }
 0x28c   : > { %1400 = vst [vmem:[%s1328_s13 + $0x60] sm:$0xff] %v1399_v56  ;;  %v1415_v27 = vld [vmem:[%s2371_s15 + $0x70] sm:$0xff] }
 0x28d   : > { %1416 = vst [vmem:[%s1328_s13 + $0xe0] sm:$0xff] %v1415_v27 }
 0x28f   : > { %v1401_v36 = vld [vmem:[%s2371_s15 + $0x38] sm:$0xff] }
 0x290   : > { %1402 = vst [vmem:[%s1328_s13 + $0x70] sm:$0xff] %v1401_v36  ;;  %v1417_v39 = vld [vmem:[%s2371_s15 + $0x78] sm:$0xff] }
 0x291   : > { %1418 = vst [vmem:[%s1328_s13 + $0xf0] sm:$0xff] %v1417_v39 }
 0x292 PF: > { %s14_s21 = sadd.s32 1, %s1881_s21   ;;  %s2439_s15 = smov %s1861_s16 }
 0x293   : > { %p11_p12 = scmp.ge.s32.totalorder %s14_s21, 6   ;;  %s2440_s16 = smov %s1965_s30 }
 0x294   : > { %s2441_s17 = smov %s1873_s19  ;;  %s2442_s18 = smov %s1877_s20 }
 0x295   : > { %s2443_s19 = smov %s2446_s22  ;;  %s2444_s20 = smov %s2450_s23 }
 0x296   :  { %13 = sbr.rel (!%p11_p12) target bundleno = 4 (0x4), region = 107 }

</bundles_post_ra>
